<compile_context>
chip_gen: v6e
topology: v6e:2x2x1
jax: 0.10.0
libtpu: 0.0.40
codegen_flags: <defaults>
</compile_context>

<pallas_src>
import functools

import jax
import jax.numpy as jnp
from jax.experimental import pallas as pl
from jax.experimental.pallas import tpu as pltpu


# ---------------------------------------------------------------------------
# Helpers: padded-VMEM budgeting
# ---------------------------------------------------------------------------

def _pack(dtype) -> int:
    """Elements packed per 32-bit sublane word for this dtype (1 for f32, 2 for bf16, ...)."""
    return max(1, 4 // jnp.dtype(dtype).itemsize)


def _round_up(x: int, m: int) -> int:
    return ((x + m - 1) // m) * m


def _padded_tile_bytes(sublane_dim: int, lane_dim: int, dtype) -> int:
    """VMEM footprint of a 2-D (sublane_dim, lane_dim) tile after (8*pack, 128) padding."""
    itemsize = jnp.dtype(dtype).itemsize
    p = _pack(dtype)
    return _round_up(max(1, sublane_dim), 8 * p) * _round_up(max(1, lane_dim), 128) * itemsize


def _vmem_capacity_bytes() -> int:
    try:
        return int(pltpu.get_tpu_info().vmem_capacity_bytes)
    except Exception:
        return 64 << 20  # conservative: v7x per-TC VMEM


def _pick_batch_tile(B: int, per_row_padded_bytes: int, out_align: int,
                     target_block_bytes: int) -> int:
    """Batch tile: ~target bytes of *padded* input per grid step, aligned to the
    output dtype's sublane packing (or the full batch)."""
    tb = max(1, target_block_bytes // max(1, per_row_padded_bytes))
    if tb >= B:
        return B
    tb = (tb // out_align) * out_align
    if tb < out_align:
        # Each batch row's frame is already very large; fall back to one aligned
        # group of rows (or the whole batch if it is smaller than that).
        return B if B <= out_align else out_align
    return tb


# ---------------------------------------------------------------------------
# Kernels
# ---------------------------------------------------------------------------

def _two_frame_kernel(x_ref, out_ref):
    # x_ref:  (TB, F, D) VMEM tile of one CLS frame (frame dim squeezed by the BlockSpec).
    # out_ref: (TB, D)   lane-aligned, full-width store.
    f = x_ref.shape[1]
    # Only f32 intermediate is the (TB, D) accumulator (no full-tile upcast).
    s = jnp.sum(x_ref[...], axis=1, dtype=jnp.float32)
    out_ref[...] = (s * jnp.float32(1.0 / f)).astype(out_ref.dtype)


def _slab_kernel_concat(x_ref, out_ref, *, last_frame, d):
    # x_ref:  (TB, T+2, F, D) contiguous slab; out_ref: (TB, 2*D), D % 128 == 0.
    f = x_ref.shape[2]
    inv_f = jnp.float32(1.0 / f)
    start = jnp.sum(x_ref[:, 0, :, :], axis=1, dtype=jnp.float32) * inv_f
    end = jnp.sum(x_ref[:, last_frame, :, :], axis=1, dtype=jnp.float32) * inv_f
    out_ref[:, :d] = start.astype(out_ref.dtype)   # lane-aligned (d % 128 == 0)
    out_ref[:, d:] = end.astype(out_ref.dtype)


def _slab_kernel_stacked(x_ref, out_ref, *, last_frame):
    # x_ref:  (TB, T+2, F, D) contiguous slab; out_ref: (2, TB, D).
    f = x_ref.shape[2]
    inv_f = jnp.float32(1.0 / f)
    start = jnp.sum(x_ref[:, 0, :, :], axis=1, dtype=jnp.float32) * inv_f
    end = jnp.sum(x_ref[:, last_frame, :, :], axis=1, dtype=jnp.float32) * inv_f
    out_ref[0] = start.astype(out_ref.dtype)
    out_ref[1] = end.astype(out_ref.dtype)


# ---------------------------------------------------------------------------
# Wrapper
# ---------------------------------------------------------------------------

def cls_pooling(x: jax.Array, *, batch_tile: int | None = None) -> jax.Array:
    """CLS pooling: (B, T+2, F, D) -> (B, 2*D)."""
    B, T_with_cls, F, D = x.shape
    assert T_with_cls >= 2, "Input must include at least 2 CLS frames."

    in_dtype = x.dtype
    out_dtype = x.dtype
    itemsize = jnp.dtype(in_dtype).itemsize
    out_align = 8 * _pack(out_dtype)       # sublane packing of the output dtype
    concat_out = (D % 128 == 0)            # direct (B, 2*D) output is lane-aligned

    # Generation-aware per-step input byte target (padded bytes): ~vmem/8 per step,
    # clamped to [4 MiB, 16 MiB] -> 8 MiB/step on v7x (64 MiB VMEM), 16 MiB on v5e/v6e.
    vmem_cap = _vmem_capacity_bytes()
    target_block_bytes = max(4 << 20, min(16 << 20, vmem_cap // 8))

    # Small-frame branch: tiny strided per-frame runs are descriptor/latency bound;
    # reading the whole contiguous slab is net faster when T+2 is small.
    frame_logical_bytes = F * D * itemsize
    use_slab = (T_with_cls <= 8) and (frame_logical_bytes < 2048)

    frame_padded_bytes = _padded_tile_bytes(F, D, in_dtype)  # one (F, D) frame in VMEM
    per_row_padded = (T_with_cls if use_slab else 1) * frame_padded_bytes

    if batch_tile is None:
        TB = _pick_batch_tile(B, per_row_padded, out_align, target_block_bytes)
    else:
        TB = min(B, int(batch_tile))
    num_b_tiles = pl.cdiv(B, TB)

    # Explicit scoped-VMEM limit: 2x (double buffer) * (padded input + output tile)
    # + 25% headroom, clamped under physical VMEM.
    in_step_bytes = TB * per_row_padded
    if concat_out:
        out_step_bytes = _padded_tile_bytes(TB, (2 * D) if use_slab else D, out_dtype)
    else:
        out_step_bytes = 2 * _padded_tile_bytes(TB, D, out_dtype)
    vmem_limit = int(2.0 * (in_step_bytes + out_step_bytes) * 1.25) + (1 << 20)
    vmem_limit = max(vmem_limit, 16 << 20)
    vmem_limit = min(vmem_limit, int(vmem_cap * 0.75))

    # Tell XLA only the two CLS frames are read (not all of x).
    cost = pl.CostEstimate(
        flops=2 * B * F * D,
        transcendentals=0,
        bytes_accessed=2 * B * F * D * itemsize
        + B * 2 * D * jnp.dtype(out_dtype).itemsize,
    )

    if use_slab:
        # One grid axis over batch tiles; both CLS frames reduced in-kernel.
        in_spec = pl.BlockSpec((TB, T_with_cls, F, D), lambda b: (b, 0, 0, 0))
        if concat_out:
            kernel = functools.partial(_slab_kernel_concat,
                                       last_frame=T_with_cls - 1, d=D)
            out_shape = jax.ShapeDtypeStruct((B, 2 * D), out_dtype)
            out_spec = pl.BlockSpec((TB, 2 * D), lambda b: (b, 0))
        else:
            kernel = functools.partial(_slab_kernel_stacked,
                                       last_frame=T_with_cls - 1)
            out_shape = jax.ShapeDtypeStruct((2, B, D), out_dtype)
            out_spec = pl.BlockSpec((2, TB, D), lambda b: (0, b, 0))

        pooled = pl.pallas_call(
            kernel,
            out_shape=out_shape,
            grid=(num_b_tiles,),
            in_specs=[in_spec],
            out_specs=out_spec,
            compiler_params=pltpu.CompilerParams(
                dimension_semantics=("parallel",),
                vmem_limit_bytes=vmem_limit,
            ),
            cost_estimate=cost,
        )(x)
    else:
        # Grid: (batch tiles, 2 frames). Frame axis f in {0, 1} selects frame 0 or T+1
        # via the index_map; the frame dim is squeezed so the kernel ref is (TB, F, D).
        in_spec = pl.BlockSpec(
            (TB, pl.Squeezed(), F, D),
            lambda b, f: (b, f * (T_with_cls - 1), 0, 0),
        )
        if concat_out:
            out_shape = jax.ShapeDtypeStruct((B, 2 * D), out_dtype)
            out_spec = pl.BlockSpec((TB, D), lambda b, f: (b, f))
        else:
            out_shape = jax.ShapeDtypeStruct((2, B, D), out_dtype)
            out_spec = pl.BlockSpec((pl.Squeezed(), TB, D), lambda b, f: (f, b, 0))

        pooled = pl.pallas_call(
            _two_frame_kernel,
            out_shape=out_shape,
            grid=(num_b_tiles, 2),
            in_specs=[in_spec],
            out_specs=out_spec,
            compiler_params=pltpu.CompilerParams(
                # Both axes are fully independent (distinct output blocks); letting the
                # 2-wide frame axis shard keeps both v7x TensorCores busy.
                dimension_semantics=("parallel", "parallel"),
                vmem_limit_bytes=vmem_limit,
            ),
            cost_estimate=cost,
        )(x)

    if concat_out:
        return pooled
    # (2, B, D) -> (B, 2*D) fallback for D % 128 != 0.
    return jnp.concatenate([pooled[0], pooled[1]], axis=-1)


def cls_pooling_ref(x: jax.Array) -> jax.Array:
    """Pure-JAX reference matching the PyTorch forward (computed in f32)."""
    cls_start = x[:, 0, :, :].astype(jnp.float32)
    cls_end = x[:, -1, :, :].astype(jnp.float32)
    return jnp.concatenate([cls_start.mean(axis=1), cls_end.mean(axis=1)], axis=-1)


if __name__ == "__main__":
    key = jax.random.PRNGKey(0)

    test_cases = [
        # slab path (tiny frames), stacked (2,B,D) output since D % 128 != 0
        dict(shape=(2, 6, 8, 32), dtype=jnp.float32, batch_tile=None, atol=1e-5),
        # two-frame path, direct (B, 2*D) output (D % 128 == 0), bf16
        dict(shape=(4, 4, 16, 256), dtype=jnp.bfloat16, batch_tile=None, atol=2e-2),
        # two-frame path, direct output, non-divisible batch -> masked last tile
        dict(shape=(12, 6, 16, 128), dtype=jnp.float32, batch_tile=8, atol=1e-5),
        # slab path, stacked output, non-divisible batch -> masked last tile
        dict(shape=(12, 6, 8, 32), dtype=jnp.float32, batch_tile=8, atol=1e-5),
    ]

    for i, tc in enumerate(test_cases):
        key, sub = jax.random.split(key)
        x = jax.random.normal(sub, tc["shape"], dtype=jnp.float32).astype(tc["dtype"])
        out = cls_pooling(x, batch_tile=tc["batch_tile"])
        out = jax.block_until_ready(out)

        ref = cls_pooling_ref(x)
        B, _, _, D = tc["shape"]
        assert out.shape == (B, 2 * D), f"case {i}: bad shape {out.shape}"
        assert out.dtype == x.dtype, f"case {i}: bad dtype {out.dtype}"
        err = float(jnp.max(jnp.abs(out.astype(jnp.float32) - ref)))
        assert err <= tc["atol"], f"case {i}: max abs err {err} > {tc['atol']}"

    print("KERNEL_OK")
</pallas_src>

<mosaic_0001>
module attributes {stable_mosaic.version = 11 : i64} {
  func.func @_slab_kernel_stacked(%arg0: i32, %arg1: memref<2x6x8x32xf32, #tpu.memory_space<vmem>>, %arg2: memref<2x2x32xf32, #tpu.memory_space<vmem>>) attributes {dimension_semantics = [#tpu.dimension_semantics<parallel>], iteration_bounds = array<i64: 1>, scalar_prefetch = 0 : i64, scratch_operands = 0 : i64, tpu.core_type = #tpu.core_type<tc>, window_params = [{transform_indices = @transform_0, window_bounds = array<i64: 2, 6, 8, 32>}, {transform_indices = @transform_1, window_bounds = array<i64: 2, 2, 32>}]} {
    %c0 = arith.constant 0 : index
    %c0_0 = arith.constant 0 : index
    %c0_1 = arith.constant 0 : index
    %c0_2 = arith.constant 0 : index
    %0 = vector.load %arg1[%c0, %c0_0, %c0_1, %c0_2] : memref<2x6x8x32xf32, #tpu.memory_space<vmem>>, vector<2x1x8x32xf32>
    %1 = vector.shape_cast %0 : vector<2x1x8x32xf32> to vector<2x8x32xf32>
    %cst = arith.constant dense<0.000000e+00> : vector<2x32xf32>
    %2 = vector.multi_reduction <add>, %1, %cst [1] : vector<2x8x32xf32> to vector<2x32xf32>
    %cst_3 = arith.constant 1.250000e-01 : f32
    %3 = vector.broadcast %cst_3 : f32 to vector<2x32xf32>
    %4 = arith.mulf %2, %3 : vector<2x32xf32>
    %c0_4 = arith.constant 0 : index
    %c5 = arith.constant 5 : index
    %c0_5 = arith.constant 0 : index
    %c0_6 = arith.constant 0 : index
    %5 = vector.load %arg1[%c0_4, %c5, %c0_5, %c0_6] : memref<2x6x8x32xf32, #tpu.memory_space<vmem>>, vector<2x1x8x32xf32>
    %6 = vector.shape_cast %5 : vector<2x1x8x32xf32> to vector<2x8x32xf32>
    %cst_7 = arith.constant dense<0.000000e+00> : vector<2x32xf32>
    %7 = vector.multi_reduction <add>, %6, %cst_7 [1] : vector<2x8x32xf32> to vector<2x32xf32>
    %cst_8 = arith.constant 1.250000e-01 : f32
    %8 = vector.broadcast %cst_8 : f32 to vector<2x32xf32>
    %9 = arith.mulf %7, %8 : vector<2x32xf32>
    %c0_9 = arith.constant 0 : index
    %c0_10 = arith.constant 0 : index
    %c0_11 = arith.constant 0 : index
    %10 = vector.load %arg2[%c0_9, %c0_10, %c0_11] : memref<2x2x32xf32, #tpu.memory_space<vmem>>, vector<1x2x32xf32>
    %11 = vector.shape_cast %10 : vector<1x2x32xf32> to vector<2x32xf32>
    %12 = vector.shape_cast %4 : vector<2x32xf32> to vector<1x2x32xf32>
    tpu.vector_store %arg2[%c0_9, %c0_10, %c0_11], %12 {strides = array<i32>} : memref<2x2x32xf32, #tpu.memory_space<vmem>>, vector<1x2x32xf32>,
    %c1 = arith.constant 1 : index
    %c0_12 = arith.constant 0 : index
    %c0_13 = arith.constant 0 : index
    %13 = vector.load %arg2[%c1, %c0_12, %c0_13] : memref<2x2x32xf32, #tpu.memory_space<vmem>>, vector<1x2x32xf32>
    %14 = vector.shape_cast %13 : vector<1x2x32xf32> to vector<2x32xf32>
    %15 = vector.shape_cast %9 : vector<2x32xf32> to vector<1x2x32xf32>
    tpu.vector_store %arg2[%c1, %c0_12, %c0_13], %15 {strides = array<i32>} : memref<2x2x32xf32, #tpu.memory_space<vmem>>, vector<1x2x32xf32>,
    return
  }
  func.func @transform_0(%arg0: i32) -> (i32, i32, i32, i32) {
    %c0_i32 = arith.constant 0 : i32
    %c0_i32_0 = arith.constant 0 : i32
    %c0_i32_1 = arith.constant 0 : i32
    %c0_i32_2 = arith.constant 0 : i32
    return %arg0, %c0_i32, %c0_i32_0, %c0_i32_1 : i32, i32, i32, i32
  }
  func.func @transform_1(%arg0: i32) -> (i32, i32, i32) {
    %c0_i32 = arith.constant 0 : i32
    %c0_i32_0 = arith.constant 0 : i32
    %c0_i32_1 = arith.constant 0 : i32
    return %c0_i32, %arg0, %c0_i32_0 : i32, i32, i32
  }
}

</mosaic_0001>

<bundles_post_ra>
// kernel: tpu_custom_call.1
= control target key start
LH: loop header
LB: loop body
LE: loop exit
PB: predicated region body
PF: predicated region fallthrough
CT: control target
= control target key end

     0   :  { %6 = vsyncpa [#allocation3], 0  ;;  %s163_s0 = inlined_call_operand.hbm [shape: f32[2,6,8,32], index: 0, kind: input, shape index: {}]   ;;  %s164_s1 = inlined_call_operand.hbm [shape: f32[2,2,32], index: 1, kind: output, shape index: {}]  }
   0x1   :  { %7 = vsyncpa [#allocation4], 0  ;;  %s141_s6 = smov [#allocation2]  }
   0x2   :  { %s13_s7 = sshll.u32 %s141_s6, 4  ;;  %s14_s7 = int_to_ptr.vmem [resolvable:$true] %s13_s7 }
   0x3   :  { %s105_s8 = scalar_lea.vmem %s14_s7, 1536  ;;  %p110_p1 = scmp.lt.s32.totalorder %s14_s7, %s14_s7 }
   0x4   :  { %p106_p0 = scmp.ne.s32.totalorder %s14_s7, %s105_s8  ;;  %p111_p2 = scmp.lt.s32.totalorder %s105_s8, %s105_s8 }
   0x6   :  { %p112_p3 = por %p111_p2, %p110_p1 }
   0x8   :  { %p113_p4 = pnand %p112_p3, %p106_p0 }
   0xa   :  { %116 = shalt.err (!%p113_p4)
}
   0xb   :  { %s142_s9 = smov 128   ;;  %s143_s10 = smov 8  }
   0xc   :  { %19 = dma.hbm_to_vmem [thread:$0]  %s163_s0, 1536, %s14_s7, [#allocation3], %s142_s9, %s142_s9, %s143_s10  }
   0xd   :  { %137 = dma.done.wait [#allocation3], 1536  }
   0xe   :  { %138 = vsyncadd [#allocation3], 4294965760  ;;  %vm25_vm0 = vcmask 261120   ;;  %v23_v0 = vld [vmem:[#allocation2] sm:$0xff]  ;;  %v24_v1 = vld [vmem:[#allocation2 + $0x30] sm:$0xff]  ;;  %vm63_vm1 = vcmask 1041409  }
   0xf   :  { %v43_v2 = vld [vmem:[#allocation2 + $0x28] sm:$0xff]  ;;  %v26_v3 = vsel %vm25_vm0, %v23_v0, 0.0  ;;  %v33_v4 = vsel %vm25_vm0, %v24_v1, 0.0  ;;  %v44_v5 = vld [vmem:[#allocation2 + $0x58] sm:$0xff]  ;;  %s144_s0 = smov [#allocation5]   ;;  %vm66_vm2 = vcmask 254976  }
  0x10   :  { %v45_v6 = vsel %vm25_vm0, %v43_v2, 0.0  ;;  %v27_v7 = vrot.slane %v26_v3, 4  ;;  %v34_v8 = vrot.slane %v33_v4, 4  ;;  %v52_v10 = vsel %vm25_vm0, %v44_v5, 0.0  ;;  %s79_s13 = sshll.u32 %s144_s0, 4  ;;  %s80_s13 = int_to_ptr.vmem [resolvable:$true] %s79_s13 }
  0x11   :  { %v46_v9 = vrot.slane %v45_v6, 4  ;;  %v53_v11 = vrot.slane %v52_v10, 4  ;;  %s117_s14 = scalar_lea.vmem %s80_s13, 64  ;;  %p122_p6 = scmp.lt.s32.totalorder %s80_s13, %s80_s13 }
  0x12   :  { %v28_v12 = vadd.f32 %v27_v7, %v26_v3  ;;  %v35_v13 = vadd.f32 %v34_v8, %v33_v4  ;;  %p118_p5 = scmp.ne.s32.totalorder %s80_s13, %s117_s14  ;;  %p123_p7 = scmp.lt.s32.totalorder %s117_s14, %s117_s14 }
  0x13   :  { %v47_v14 = vadd.f32 %v46_v9, %v45_v6  ;;  %v54_v15 = vadd.f32 %v53_v11, %v52_v10 }
  0x14   :  { %v29_v16 = vrot.slane %v28_v12, 2  ;;  %v36_v17 = vrot.slane %v35_v13, 2  ;;  %p124_p8 = por %p123_p7, %p122_p6 }
  0x15   :  { %v48_v18 = vrot.slane %v47_v14, 2  ;;  %v55_v19 = vrot.slane %v54_v15, 2 }
  0x16   :  { %v30_v20 = vadd.f32 %v29_v16, %v28_v12  ;;  %v37_v21 = vadd.f32 %v36_v17, %v35_v13  ;;  %p125_p9 = pnand %p124_p8, %p118_p5 }
  0x17   :  { %v49_v22 = vadd.f32 %v48_v18, %v47_v14  ;;  %v56_v23 = vadd.f32 %v55_v19, %v54_v15 }
  0x18   :  { %v31_v24 = vrot.slane %v30_v20, 1  ;;  %v38_v25 = vrot.slane %v37_v21, 1 }
  0x19   :  { %v50_v26 = vrot.slane %v49_v22, 1  ;;  %v57_v27 = vrot.slane %v56_v23, 1 }
  0x1a   :  { %v32_v28 = vadd.f32 %v31_v24, %v30_v20  ;;  %v39_v29 = vadd.f32 %v38_v25, %v37_v21 }
  0x1b   :  { %v51_v30 = vadd.f32 %v50_v26, %v49_v22  ;;  %v58_v31 = vadd.f32 %v57_v27, %v56_v23 }
  0x1c   :  { %v40_v32 = vmul.f32 0.125, %v32_v28  ;;  %v41_v33 = vmul.f32 0.125, %v39_v29 }
  0x1d   :  { %v59_v34 = vmul.f32 0.125, %v51_v30  ;;  %v60_v35 = vmul.f32 0.125, %v58_v31 }
  0x1e   :  { %v64_v36 = vsel %vm63_vm1, %v41_v33, %v40_v32 }
  0x1f   :  { %67 = vst.msk [vmem:[#allocation5] sm:$0x3] %vm66_vm2, %v64_v36  ;;  %v70_v37 = vsel %vm63_vm1, %v60_v35, %v59_v34 }
  0x20   :  { %73 = vst.msk [vmem:[#allocation5 + $0x2] sm:$0x3] %vm66_vm2, %v70_v37 }
  0x21   :  { %128 = shalt.err (!%p125_p9)
}
  0x22   :  { %s145_s15 = smov 32   ;;  %s146_s16 = smov 2  }
  0x23   :  { %85 = dma.vmem_to_hbm [thread:$0]  %s80_s13, 64, %s164_s1, [#allocation4], %s145_s15, %s145_s15, %s146_s16  }
  0x24   :  { %139 = dma.done.wait [#allocation4], 64  }
  0x25   :  { %140 = vsyncadd [#allocation4], 4294967232 }
  0x26   :  { %89 = vsyncpa [#allocation3], 1 }
  0x27   :  { %90 = vsyncpa [#allocation4], 1 }

</bundles_post_ra>
